<compile_context>
chip_gen: v7x
topology: tpu7x:2x2x1
jax: 0.10.0
libtpu: 0.0.40
codegen_flags: <defaults>
</compile_context>

<pallas_src>
import functools
import math

import jax
import jax.numpy as jnp
from jax.experimental import pallas as pl
from jax.experimental.pallas import tpu as pltpu


# --------------------------------------------------------------------------- #
# helpers / per-generation configuration
# --------------------------------------------------------------------------- #

def _pick_tile(dim, pref, align):
    """Largest multiple of `align` that divides `dim` and is <= pref.

    Falls back to the full dim (always a legal block) if nothing fits.
    """
    if dim <= pref or dim % align != 0:
        return dim
    t = min(pref, dim)
    t -= t % align
    while t >= align:
        if dim % t == 0:
            return t
        t -= align
    return dim


def _device_config():
    """Generation-dependent VMEM budget and default tile sizes."""
    vmem_bytes = 128 * 1024 * 1024
    try:
        info = pltpu.get_tpu_info()
        vmem_bytes = int(getattr(info, "vmem_capacity_bytes", vmem_bytes)) or vmem_bytes
    except Exception:
        pass
    if vmem_bytes >= 100 * 1024 * 1024:
        # v5e / v6e: 128 MiB VMEM -> large row tiles to cut weight re-streaming.
        return dict(vmem_limit=100 * 1024 * 1024, tm=512, tn=512, tk=512,
                    ffn_tk=512, q_tile=512, kv_tile=512)
    # v7x: 64 MiB VMEM per core -> smaller tiles, leave headroom.
    return dict(vmem_limit=48 * 1024 * 1024, tm=256, tn=256, tk=256,
                ffn_tk=256, q_tile=256, kv_tile=256)


_DEV = _device_config()


# --------------------------------------------------------------------------- #
# fused RMSNorm + projection (used for the concatenated wq|wk|wv weight)
# norm is computed once per row tile (at j == 0) into a VMEM scratch
# --------------------------------------------------------------------------- #

def _rmsnorm_matmul_kernel(x_ref, g_ref, w_ref, o_ref, xn_ref, *, eps):
    @pl.when(pl.program_id(1) == 0)
    def _():
        x = x_ref[...].astype(jnp.float32)                   # (tm, D)
        inv = jax.lax.rsqrt(jnp.mean(x * x, axis=-1, keepdims=True) + eps)
        xn_ref[...] = (x * inv * g_ref[...].astype(jnp.float32)).astype(xn_ref.dtype)

    o_ref[...] = jnp.dot(xn_ref[...], w_ref[...],
                         preferred_element_type=jnp.float32).astype(o_ref.dtype)


def rmsnorm_matmul(x2d, gamma, w, eps, *, tm=None, tn=None):
    M, D = x2d.shape
    _, N = w.shape
    tm = _pick_tile(M, tm or _DEV["tm"], 16)
    tn = _pick_tile(N, tn or _DEV["tn"], 128)
    return pl.pallas_call(
        functools.partial(_rmsnorm_matmul_kernel, eps=eps),
        out_shape=jax.ShapeDtypeStruct((M, N), x2d.dtype),
        grid=(M // tm, N // tn),
        in_specs=[
            pl.BlockSpec((tm, D), lambda i, j: (i, 0)),
            pl.BlockSpec((1, D), lambda i, j: (0, 0)),
            pl.BlockSpec((D, tn), lambda i, j: (0, j)),
        ],
        out_specs=pl.BlockSpec((tm, tn), lambda i, j: (i, j)),
        scratch_shapes=[pltpu.VMEM((tm, D), x2d.dtype)],      # cached normalized rows
        compiler_params=pltpu.CompilerParams(
            # N must be 'arbitrary' so every core sees j==0 first for its rows.
            dimension_semantics=("parallel", "arbitrary"),
            vmem_limit_bytes=_DEV["vmem_limit"]),
    )(x2d, gamma.reshape(1, D), w)


# --------------------------------------------------------------------------- #
# tiled matmul + residual (wo projection), K as the reduction axis
# --------------------------------------------------------------------------- #

def _matmul_residual_kernel(x_ref, w_ref, r_ref, o_ref, acc_ref):
    k = pl.program_id(2)

    @pl.when(k == 0)
    def _():
        acc_ref[...] = jnp.zeros_like(acc_ref)

    acc_ref[...] += jnp.dot(x_ref[...], w_ref[...],
                            preferred_element_type=jnp.float32)

    @pl.when(k == pl.num_programs(2) - 1)
    def _():
        o_ref[...] = (acc_ref[...] + r_ref[...].astype(jnp.float32)).astype(o_ref.dtype)


def matmul_residual(x2d, w, res2d, *, tm=None, tn=None, tk=None):
    M, K = x2d.shape
    _, N = w.shape
    tm = _pick_tile(M, tm or _DEV["tm"], 16)
    tn = _pick_tile(N, tn or _DEV["tn"], 128)
    tk = _pick_tile(K, tk or _DEV["tk"], 128)
    return pl.pallas_call(
        _matmul_residual_kernel,
        out_shape=jax.ShapeDtypeStruct((M, N), x2d.dtype),
        grid=(M // tm, N // tn, K // tk),
        in_specs=[
            pl.BlockSpec((tm, tk), lambda i, j, k: (i, k)),
            pl.BlockSpec((tk, tn), lambda i, j, k: (k, j)),
            pl.BlockSpec((tm, tn), lambda i, j, k: (i, j)),
        ],
        out_specs=pl.BlockSpec((tm, tn), lambda i, j, k: (i, j)),
        scratch_shapes=[pltpu.VMEM((tm, tn), jnp.float32)],
        compiler_params=pltpu.CompilerParams(
            dimension_semantics=("parallel", "parallel", "arbitrary"),
            vmem_limit_bytes=_DEV["vmem_limit"]),
    )(x2d, w, res2d)


# --------------------------------------------------------------------------- #
# fully fused FFN: ffn_norm + w1 + w3 + SiLU gate + w2 + residual
#   - hidden dim tiled as the K reduction; "gated" never hits HBM
#   - normalized rows computed once per row tile (k == 0) into VMEM scratch
#   - x_ref doubles as the residual in the finalize (no duplicate HBM stream)
# --------------------------------------------------------------------------- #

def _ffn_kernel(x_ref, g_ref, w1_ref, w3_ref, w2_ref, o_ref, xn_ref, acc_ref, *, eps):
    k = pl.program_id(1)

    @pl.when(k == 0)
    def _():
        acc_ref[...] = jnp.zeros_like(acc_ref)
        x = x_ref[...].astype(jnp.float32)                    # (tm, D)
        inv = jax.lax.rsqrt(jnp.mean(x * x, axis=-1, keepdims=True) + eps)
        xn_ref[...] = (x * inv * g_ref[...].astype(jnp.float32)).astype(xn_ref.dtype)

    xn = xn_ref[...]
    a = jnp.dot(xn, w1_ref[...], preferred_element_type=jnp.float32)
    b = jnp.dot(xn, w3_ref[...], preferred_element_type=jnp.float32)
    gated = (a * jax.nn.sigmoid(a) * b).astype(w2_ref.dtype)  # silu(a) * b
    acc_ref[...] += jnp.dot(gated, w2_ref[...], preferred_element_type=jnp.float32)

    @pl.when(k == pl.num_programs(1) - 1)
    def _():
        o_ref[...] = (acc_ref[...] + x_ref[...].astype(jnp.float32)).astype(o_ref.dtype)


def ffn_fused(x2d, gamma, w1, w3, w2, eps, *, tm=None, tk=None):
    M, D = x2d.shape
    Hdim = w1.shape[1]
    if tm is None:
        # f32 operands double every block: halve the row tile to stay in VMEM.
        tm = _DEV["tm"] if x2d.dtype.itemsize <= 2 else max(128, _DEV["tm"] // 2)
    tm = _pick_tile(M, tm, 16)
    tk = _pick_tile(Hdim, tk or _DEV["ffn_tk"], 128)
    return pl.pallas_call(
        functools.partial(_ffn_kernel, eps=eps),
        out_shape=jax.ShapeDtypeStruct((M, D), x2d.dtype),
        grid=(M // tm, Hdim // tk),
        in_specs=[
            pl.BlockSpec((tm, D), lambda i, k: (i, 0)),
            pl.BlockSpec((1, D), lambda i, k: (0, 0)),
            pl.BlockSpec((D, tk), lambda i, k: (0, k)),
            pl.BlockSpec((D, tk), lambda i, k: (0, k)),
            pl.BlockSpec((tk, D), lambda i, k: (k, 0)),
        ],
        out_specs=pl.BlockSpec((tm, D), lambda i, k: (i, 0)),
        scratch_shapes=[pltpu.VMEM((tm, D), x2d.dtype),        # cached normalized rows
                        pltpu.VMEM((tm, D), jnp.float32)],     # output accumulator
        compiler_params=pltpu.CompilerParams(
            dimension_semantics=("parallel", "arbitrary"),
            vmem_limit_bytes=_DEV["vmem_limit"]),
    )(x2d, gamma.reshape(1, D), w1, w3, w2)


# --------------------------------------------------------------------------- #
# flash-style GQA attention, q- and kv-tiled, in-kernel causal mask
#   q        : (B, KVH, n_rep, S, hd)   (rep-major query heads per KV head)
#   cache_k/v: (max_bs, KVH, max_seq, hd)
#   output   : (B, S, H*hd)             lane-dense, head-major columns
# --------------------------------------------------------------------------- #

def _flash_attn_kernel(q_ref, k_ref, v_ref, o_ref, m_ref, l_ref, acc_ref, *, start_pos):
    qi = pl.program_id(2)
    t = pl.program_id(3)
    n_rep, tq_seq, hd = q_ref.shape
    tkv = k_ref.shape[0]

    @pl.when(t == 0)
    def _():
        m_ref[...] = jnp.full_like(m_ref, -jnp.inf)
        l_ref[...] = jnp.zeros_like(l_ref)
        acc_ref[...] = jnp.zeros_like(acc_ref)

    # Highest query position handled by this q tile; KV tiles strictly in the
    # future of it are fully masked and skipped entirely.
    q_hi = start_pos + (qi + 1) * tq_seq - 1

    @pl.when(t * tkv <= q_hi)
    def _():
        k = k_ref[...]                                  # (tkv, hd)
        v = v_ref[...]                                  # (tkv, hd)
        # causal mask, shared by all n_rep query heads of this KV head
        rows = jax.lax.broadcasted_iota(jnp.int32, (tq_seq, 1), 0)
        q_pos = start_pos + qi * tq_seq + rows          # (tq_seq, 1)
        cols = jax.lax.broadcasted_iota(jnp.int32, (tq_seq, tkv), 1) + t * tkv
        unmasked = cols <= q_pos

        for r in range(n_rep):                          # static unroll over query heads
            s = jax.lax.dot_general(q_ref[r], k, (((1,), (1,)), ((), ())),
                                    preferred_element_type=jnp.float32)   # (tq_seq, tkv)
            s = jnp.where(unmasked, s, -jnp.inf)
            m_prev = m_ref[r]
            m_new = jnp.maximum(m_prev, jnp.max(s, axis=-1, keepdims=True))
            alpha = jnp.exp(m_prev - m_new)
            p = jnp.exp(s - m_new)
            l_ref[r] = alpha * l_ref[r] + jnp.sum(p, axis=-1, keepdims=True)
            acc_ref[r] = alpha * acc_ref[r] + jax.lax.dot_general(
                p.astype(v.dtype), v, (((1,), (0,)), ((), ())),
                preferred_element_type=jnp.float32)
            m_ref[r] = m_new

    @pl.when(t == pl.num_programs(3) - 1)
    def _():
        # Write the (tq_seq, n_rep*hd) lane-dense output block; each per-head
        # slice is hd (=128 in production) wide, so stores are unmasked there.
        # TODO(synk): pack 2 KV heads per block on v6e/v7x so the PV matmul's
        # N dimension fills the 256-wide MXU.
        for r in range(n_rep):
            inv = pl.reciprocal(l_ref[r], approx=True)
            o_ref[0, :, r * hd:(r + 1) * hd] = (acc_ref[r] * inv).astype(o_ref.dtype)


def flash_attention(q, cache_k, cache_v, *, start_pos, seqlen, kv_tile=None, q_tile=None):
    B, KVH, n_rep, S, hd = q.shape
    assert S == seqlen
    D = KVH * n_rep * hd
    max_seq = cache_k.shape[2]
    if kv_tile is None:
        kv_tile = _DEV["kv_tile"]
    kv_tile = min(kv_tile, max_seq)
    assert max_seq % kv_tile == 0
    if cache_k.dtype.itemsize < 4:
        assert kv_tile % 16 == 0 or kv_tile == max_seq
    total = start_pos + seqlen
    num_kv = (total + kv_tile - 1) // kv_tile       # fully-padded tiles are skipped

    if q_tile is None:
        q_tile = _DEV["q_tile"]                     # rows of the n_rep*S query axis
    tq_seq = _pick_tile(S, max(1, q_tile // n_rep), 16)
    num_q = S // tq_seq

    kernel = functools.partial(_flash_attn_kernel, start_pos=start_pos)
    return pl.pallas_call(
        kernel,
        out_shape=jax.ShapeDtypeStruct((B, seqlen, D), q.dtype),
        # largest parallel axis first (KVH) so megacore splits well even at B=1.
        grid=(KVH, B, num_q, num_kv),
        in_specs=[
            pl.BlockSpec((None, None, n_rep, tq_seq, hd),
                         lambda g, b, qi, t: (b, g, 0, qi, 0)),
            pl.BlockSpec((None, None, kv_tile, hd),
                         lambda g, b, qi, t: (b, g, t, 0)),
            pl.BlockSpec((None, None, kv_tile, hd),
                         lambda g, b, qi, t: (b, g, t, 0)),
        ],
        out_specs=pl.BlockSpec((1, tq_seq, n_rep * hd),
                               lambda g, b, qi, t: (b, qi, g)),
        scratch_shapes=[
            pltpu.VMEM((n_rep, tq_seq, 1), jnp.float32),    # running max
            pltpu.VMEM((n_rep, tq_seq, 1), jnp.float32),    # running sum
            pltpu.VMEM((n_rep, tq_seq, hd), jnp.float32),   # output accumulator
        ],
        compiler_params=pltpu.CompilerParams(
            dimension_semantics=("parallel", "parallel", "parallel", "arbitrary"),
            vmem_limit_bytes=_DEV["vmem_limit"]),
    )(q, cache_k, cache_v)


# --------------------------------------------------------------------------- #
# JAX glue: RoPE + cache update
# --------------------------------------------------------------------------- #

def precompute_freqs(head_dim, end, theta):
    freqs = 1.0 / (theta ** (jnp.arange(0, head_dim, 2, dtype=jnp.float32) / head_dim))
    t = jnp.arange(end, dtype=jnp.float32)
    f = jnp.outer(t, freqs)                        # (end, head_dim // 2)
    return jnp.cos(f), jnp.sin(f)


# TODO(synk): fuse RoPE + the GQA head regroup into the QKV projection kernel's
# epilogue (paired-lane rotate on the q/k column ranges) to remove this small
# JAX-side elementwise pass over the current chunk.
def apply_rope(x, cos, sin):
    # x: (B, S, H, hd); cos/sin: (S, hd//2) — matches torch view_as_complex pairing.
    B, S, Hx, hd = x.shape
    xr = x.astype(jnp.float32).reshape(B, S, Hx, hd // 2, 2)
    x0, x1 = xr[..., 0], xr[..., 1]
    c = cos[None, :, None, :]
    s = sin[None, :, None, :]
    o0 = x0 * c - x1 * s
    o1 = x0 * s + x1 * c
    out = jnp.stack([o0, o1], axis=-1).reshape(B, S, Hx, hd)
    return out.astype(x.dtype)


def transformer_block(x, start_pos, cos, sin, params, cache_k, cache_v):
    """start_pos must be a static Python int (as in the torch module)."""
    B, S, D = x.shape
    H = params["n_heads"]
    KVH = params["n_kv_heads"]
    hd = D // H
    n_rep = H // KVH
    eps = params["eps"]

    x2d = x.reshape(B * S, D)

    # --- attention branch: fused RMSNorm + QKV (wq already holds 1/sqrt(hd)) ---
    qkv = rmsnorm_matmul(x2d, params["attention_norm"], params["wqkv"], eps)
    q_sz, kv_sz = H * hd, KVH * hd
    xq = qkv[:, :q_sz].reshape(B, S, H, hd)
    xk = qkv[:, q_sz:q_sz + kv_sz].reshape(B, S, KVH, hd)
    xv = qkv[:, q_sz + kv_sz:].reshape(B, S, KVH, hd)

    xq = apply_rope(xq, cos, sin)
    xk = apply_rope(xk, cos, sin)

    # KV-cache update; cache layout is (max_bs, KVH, max_seq, hd).
    xk_t = xk.transpose(0, 2, 1, 3)
    xv_t = xv.transpose(0, 2, 1, 3)
    cache_k = jax.lax.dynamic_update_slice(cache_k, xk_t, (0, 0, start_pos, 0))
    cache_v = jax.lax.dynamic_update_slice(cache_v, xv_t, (0, 0, start_pos, 0))

    # group the n_rep query heads of each KV head (query head h = g*n_rep + r).
    q_r = (xq.reshape(B, S, KVH, n_rep, hd)
             .transpose(0, 2, 3, 1, 4))            # (B, KVH, n_rep, S, hd)

    attn = flash_attention(q_r, cache_k, cache_v, start_pos=start_pos,
                           seqlen=S, kv_tile=params.get("kv_tile"),
                           q_tile=params.get("q_tile"))          # (B, S, D)

    h2d = matmul_residual(attn.reshape(B * S, D), params["wo"], x2d)   # x + wo(attn)

    # --- feed-forward branch: fully fused (norm + w1 + w3 + silu + w2 + residual) ---
    out2d = ffn_fused(h2d, params["ffn_norm"], params["w1"], params["w3"],
                      params["w2"], eps)
    return out2d.reshape(B, S, D), cache_k, cache_v


# --------------------------------------------------------------------------- #
# main
# --------------------------------------------------------------------------- #

if __name__ == "__main__":
    # Small ModelArgs-consistent config (hd*n_rep = 128 so the attention output
    # block is lane-dense even at this toy size).
    B, S = 2, 32
    D, H, KVH = 256, 8, 2
    hd = D // H                       # 32
    n_rep = H // KVH                  # 4
    start_pos = 0
    max_bs, max_seq = 4, 64
    multiple_of = 256
    norm_eps = 1e-5
    rope_theta = 500000.0

    hidden = int(2 * (4 * D) / 3)
    hidden = multiple_of * ((hidden + multiple_of - 1) // multiple_of)   # 768

    # bf16 MXU operands (fast path on v5e/v6e/v7x); all statistics and matmul
    # accumulation stay in f32 inside the kernels.
    DTYPE = jnp.bfloat16

    key = jax.random.PRNGKey(0)
    ks = jax.random.split(key, 8)
    sd = 0.02
    wq = jax.random.normal(ks[0], (D, H * hd), jnp.float32) * sd
    wk = jax.random.normal(ks[1], (D, KVH * hd), jnp.float32) * sd
    wv = jax.random.normal(ks[2], (D, KVH * hd), jnp.float32) * sd
    # fold the 1/sqrt(hd) attention scale into wq (scores = (q/sqrt(hd)) @ k^T).
    wqkv = jnp.concatenate([wq * (1.0 / math.sqrt(hd)), wk, wv], axis=1).astype(DTYPE)

    params = dict(
        wqkv=wqkv,
        wo=(jax.random.normal(ks[3], (H * hd, D), jnp.float32) * sd).astype(DTYPE),
        w1=(jax.random.normal(ks[4], (D, hidden), jnp.float32) * sd).astype(DTYPE),
        w2=(jax.random.normal(ks[5], (hidden, D), jnp.float32) * sd).astype(DTYPE),
        w3=(jax.random.normal(ks[6], (D, hidden), jnp.float32) * sd).astype(DTYPE),
        attention_norm=jnp.ones((D,), DTYPE),
        ffn_norm=jnp.ones((D,), DTYPE),
        n_heads=H,
        n_kv_heads=KVH,
        eps=norm_eps,
        kv_tile=16,    # small here to exercise the multi-tile online softmax;
                       # use 256-512 at production sizes (bf16 needs %16 == 0).
        q_tile=64,     # small here to exercise q-axis tiling; 256-512 in prod.
    )

    x = jax.random.normal(ks[7], (B, S, D), jnp.float32).astype(DTYPE)
    cache_k = jnp.zeros((max_bs, KVH, max_seq, hd), DTYPE)
    cache_v = jnp.zeros((max_bs, KVH, max_seq, hd), DTYPE)

    cos_full, sin_full = precompute_freqs(hd, max_seq, rope_theta)
    cos = cos_full[start_pos:start_pos + S]
    sin = sin_full[start_pos:start_pos + S]

    out, cache_k, cache_v = transformer_block(
        x, start_pos, cos, sin, params, cache_k, cache_v)
    jax.block_until_ready(out)
    assert out.shape == (B, S, D)
    print("KERNEL_OK")
</pallas_src>

<mosaic_0001>
module attributes {stable_mosaic.version = 11 : i64} {
  func.func @_rmsnorm_matmul_kernel(%arg0: i32, %arg1: i32, %arg2: memref<64x256xbf16, #tpu.memory_space<vmem>>, %arg3: memref<1x256xbf16, #tpu.memory_space<vmem>>, %arg4: memref<256x384xbf16, #tpu.memory_space<vmem>>, %arg5: memref<64x384xbf16, #tpu.memory_space<vmem>>, %arg6: memref<64x256xbf16, #tpu.memory_space<vmem>>) attributes {dimension_semantics = [#tpu.dimension_semantics<parallel>, #tpu.dimension_semantics<arbitrary>], iteration_bounds = array<i64: 1, 1>, scalar_prefetch = 0 : i64, scratch_operands = 1 : i64, tpu.core_type = #tpu.core_type<tc>, window_params = [{transform_indices = @transform_0, window_bounds = array<i64: 64, 256>}, {pipeline_mode = #tpu.pipeline_mode<synchronous>, transform_indices = @transform_1, window_bounds = array<i64: 1, 256>}, {transform_indices = @transform_2, window_bounds = array<i64: 256, 384>}, {transform_indices = @transform_3, window_bounds = array<i64: 64, 384>}]} {
    %c0_i32 = arith.constant 0 : i32
    %0 = arith.cmpi eq, %arg1, %c0_i32 : i32
    %1 = arith.extui %0 : i1 to i32
    %c0_i32_0 = arith.constant 0 : i32
    %2 = arith.cmpi ne, %1, %c0_i32_0 : i32
    scf.if %2 {
      %c0_6 = arith.constant 0 : index
      %c0_7 = arith.constant 0 : index
      %8 = vector.load %arg2[%c0_6, %c0_7] : memref<64x256xbf16, #tpu.memory_space<vmem>>, vector<64x256xbf16>
      %9 = arith.extf %8 : vector<64x256xbf16> to vector<64x256xf32>
      %10 = arith.mulf %9, %9 : vector<64x256xf32>
      %cst_8 = arith.constant dense<0.000000e+00> : vector<64xf32>
      %11 = vector.multi_reduction <add>, %10, %cst_8 [1] : vector<64x256xf32> to vector<64xf32>
      %12 = vector.shape_cast %11 : vector<64xf32> to vector<64x1xf32>
      %cst_9 = arith.constant 2.560000e+02 : f32
      %13 = vector.broadcast %cst_9 : f32 to vector<64x1xf32>
      %14 = arith.divf %12, %13 : vector<64x1xf32>
      %cst_10 = arith.constant 9.99999974E-6 : f32
      %15 = vector.broadcast %cst_10 : f32 to vector<64x1xf32>
      %16 = arith.addf %14, %15 : vector<64x1xf32>
      %17 = math.rsqrt %16 : vector<64x1xf32>
      %18 = vector.broadcast %17 : vector<64x1xf32> to vector<64x256xf32>
      %19 = arith.mulf %9, %18 : vector<64x256xf32>
      %c0_11 = arith.constant 0 : index
      %c0_12 = arith.constant 0 : index
      %20 = vector.load %arg3[%c0_11, %c0_12] : memref<1x256xbf16, #tpu.memory_space<vmem>>, vector<1x256xbf16>
      %21 = arith.extf %20 : vector<1x256xbf16> to vector<1x256xf32>
      %22 = vector.broadcast %21 : vector<1x256xf32> to vector<64x256xf32>
      %23 = arith.mulf %19, %22 : vector<64x256xf32>
      %24 = arith.truncf %23 : vector<64x256xf32> to vector<64x256xbf16>
      %c0_13 = arith.constant 0 : index
      %c0_14 = arith.constant 0 : index
      %25 = vector.load %arg6[%c0_13, %c0_14] : memref<64x256xbf16, #tpu.memory_space<vmem>>, vector<64x256xbf16>
      tpu.vector_store %arg6[%c0_13, %c0_14], %24 {strides = array<i32>} : memref<64x256xbf16, #tpu.memory_space<vmem>>, vector<64x256xbf16>,
    } else {
    }
    %c0 = arith.constant 0 : index
    %c0_1 = arith.constant 0 : index
    %3 = vector.load %arg6[%c0, %c0_1] : memref<64x256xbf16, #tpu.memory_space<vmem>>, vector<64x256xbf16>
    %c0_2 = arith.constant 0 : index
    %c0_3 = arith.constant 0 : index
    %4 = vector.load %arg4[%c0_2, %c0_3] : memref<256x384xbf16, #tpu.memory_space<vmem>>, vector<256x384xbf16>
    %cst = arith.constant dense<0.000000e+00> : vector<64x384xf32>
    %5 = tpu.matmul %3, %4, %cst {dimension_numbers = #tpu.dot_dimension_numbers<[1], [0], [0], [1], [0, 0, 1, 1], [], []>} : vector<64x256xbf16>, vector<256x384xbf16>, vector<64x384xf32> -> vector<64x384xf32>
    %6 = arith.truncf %5 : vector<64x384xf32> to vector<64x384xbf16>
    %c0_4 = arith.constant 0 : index
    %c0_5 = arith.constant 0 : index
    %7 = vector.load %arg5[%c0_4, %c0_5] : memref<64x384xbf16, #tpu.memory_space<vmem>>, vector<64x384xbf16>
    tpu.vector_store %arg5[%c0_4, %c0_5], %6 {strides = array<i32>} : memref<64x384xbf16, #tpu.memory_space<vmem>>, vector<64x384xbf16>,
    return
  }
  func.func @transform_0(%arg0: i32, %arg1: i32) -> (i32, i32) {
    %c0_i32 = arith.constant 0 : i32
    %c0_i32_0 = arith.constant 0 : i32
    return %arg0, %c0_i32 : i32, i32
  }
  func.func @transform_1(%arg0: i32, %arg1: i32) -> (i32, i32) {
    %c0_i32 = arith.constant 0 : i32
    %c0_i32_0 = arith.constant 0 : i32
    %c0_i32_1 = arith.constant 0 : i32
    return %c0_i32, %c0_i32_0 : i32, i32
  }
  func.func @transform_2(%arg0: i32, %arg1: i32) -> (i32, i32) {
    %c0_i32 = arith.constant 0 : i32
    %c0_i32_0 = arith.constant 0 : i32
    return %c0_i32, %arg1 : i32, i32
  }
  func.func @transform_3(%arg0: i32, %arg1: i32) -> (i32, i32) {
    %c0_i32 = arith.constant 0 : i32
    return %arg0, %arg1 : i32, i32
  }
}

</mosaic_0001>

<bundles_post_ra>
// kernel: tpu_custom_call.1
= control target key start
LH: loop header
LB: loop body
LE: loop exit
PB: predicated region body
PF: predicated region fallthrough
CT: control target
= control target key end

     0   :  { %8 = vsyncpa [#allocation4], 0  ;;  %s1268_s0 = inlined_call_operand.hbm [shape: bf16[64,256], index: 0, kind: input, shape index: {}]   ;;  %s1269_s1 = inlined_call_operand.hbm [shape: bf16[1,256], index: 1, kind: input, shape index: {}]   ;;  %s1270_s2 = inlined_call_operand.hbm [shape: bf16[256,384], index: 2, kind: input, shape index: {}]   ;;  %s1271_s3 = inlined_call_operand.hbm [shape: bf16[64,384], index: 3, kind: output, shape index: {}]  }
   0x1   :  { %9 = vsyncpa [#allocation7], 0 }
   0x2   :  { %10 = vsyncpa [#allocation5], 0  ;;  %s1099_s12 = smov [#allocation6]   ;;  %s1100_s14 = smov [#allocation3]  }
   0x3   :  { %s29_s13 = sshll.u32 %s1099_s12, 4  ;;  %s16_s15 = sshll.u32 %s1100_s14, 4  ;;  %s30_s13 = int_to_ptr.vmem [resolvable:$true] %s29_s13  ;;  %s1127_s15 = int_to_ptr.vmem [resolvable:$true] %s16_s15 }
   0x4   :  { %s1005_s18 = scalar_lea.hbm %s1269_s1, 32 }
   0x5   :  { %p1006_p0 = scmp.ne.s32.totalorder %s1269_s1, %s1005_s18  ;;  %p1009_p1 = scmp.lt.u32.totalorder %s1005_s18, %s1269_s1 }
   0x7   :  { %p1011_p2 = pnand %p1009_p1, %p1006_p0 }
   0x9   :  { %1014 = shalt.err (!%p1011_p2)
}
   0xa   :  { %s1015_s23 = scalar_lea.vmem %s30_s13, 32  ;;  %p1020_p4 = scmp.lt.s32.totalorder %s30_s13, %s30_s13 }
   0xb   :  { %p1016_p3 = scmp.ne.s32.totalorder %s30_s13, %s1015_s23  ;;  %p1021_p5 = scmp.lt.s32.totalorder %s1015_s23, %s1015_s23 }
   0xd   :  { %p1022_p6 = por %p1021_p5, %p1020_p4 }
   0xf   :  { %p1023_p7 = pnand %p1022_p6, %p1016_p3 }
  0x11   :  { %1026 = shalt.err (!%p1023_p7)
}
  0x12   :  { %32 = dma.hbm_to_vmem [thread:$0]  %s1269_s1, 32, %s30_s13, [#allocation7]  }
  0x13   :  { %s1027_s28 = scalar_lea.hbm %s1268_s0, 1024 }
  0x14   :  { %p1028_p8 = scmp.ne.s32.totalorder %s1268_s0, %s1027_s28  ;;  %p1031_p9 = scmp.lt.u32.totalorder %s1027_s28, %s1268_s0 }
  0x16   :  { %p1033_p10 = pnand %p1031_p9, %p1028_p8 }
  0x18   :  { %1036 = shalt.err (!%p1033_p10)
}
  0x19   :  { %s1037_s6 = scalar_lea.vmem %s1127_s15, 1024  ;;  %p1042_p12 = scmp.lt.s32.totalorder %s1127_s15, %s1127_s15 }
  0x1a   :  { %p1038_p11 = scmp.ne.s32.totalorder %s1127_s15, %s1037_s6  ;;  %p1043_p13 = scmp.lt.s32.totalorder %s1037_s6, %s1037_s6 }
  0x1c   :  { %p1044_p0 = por %p1043_p13, %p1042_p12 }
  0x1e   :  { %p1045_p1 = pnand %p1044_p0, %p1038_p11 }
  0x20   :  { %1048 = shalt.err (!%p1045_p1)
}
  0x21   :  { %s1101_s1 = smov 128   ;;  %s1102_s7 = smov 8  }
  0x22   :  { %22 = dma.hbm_to_vmem [thread:$0]  %s1268_s0, 1024, %s1127_s15, [#allocation4], %s1101_s1, %s1101_s1, %s1102_s7  }
  0x23   :  { %s1103_s10 = smov [#allocation8]   ;;  %s1049_s14 = scalar_lea.hbm %s1270_s2, 6144 }
  0x24   :  { %s38_s11 = sshll.u32 %s1103_s10, 4  ;;  %p1050_p2 = scmp.ne.s32.totalorder %s1270_s2, %s1049_s14  ;;  %s39_s11 = int_to_ptr.vmem [resolvable:$true] %s38_s11 }
  0x25   :  { %p1053_p3 = scmp.lt.u32.totalorder %s1049_s14, %s1270_s2 }
  0x27   :  { %p1055_p4 = pnand %p1053_p3, %p1050_p2 }
  0x29   :  { %1058 = shalt.err (!%p1055_p4)
}
  0x2a   :  { %s1059_s20 = scalar_lea.vmem %s39_s11, 6144  ;;  %p1064_p6 = scmp.lt.s32.totalorder %s39_s11, %s39_s11 }
  0x2b   :  { %p1060_p5 = scmp.ne.s32.totalorder %s39_s11, %s1059_s20  ;;  %p1065_p7 = scmp.lt.s32.totalorder %s1059_s20, %s1059_s20 }
  0x2d   :  { %p1066_p8 = por %p1065_p7, %p1064_p6 }
  0x2f   :  { %p1067_p9 = pnand %p1066_p8, %p1060_p5 }
  0x31   :  { %1070 = shalt.err (!%p1067_p9)
}
  0x32   :  { %s1104_s0 = smov 192   ;;  %s1105_s15 = smov 12  }
  0x33   :  { %44 = dma.hbm_to_vmem [thread:$0]  %s1270_s2, 6144, %s39_s11, [#allocation7], %s1104_s0, %s1104_s0, %s1105_s15  }
  0x34   :  { %1093 = dma.done.wait [#allocation4], 1024  }
  0x35   :  { %1094 = vsyncadd [#allocation4], 4294966272 }
  0x36   :  { %1095 = dma.done.wait [#allocation7], 6176  }
  0x37   :  { %1096 = vsyncadd [#allocation7], 4294961120  ;;  %v59_v0 = vld [vmem:[#allocation3] sm:$0xff]  ;;  %v61_v1 = vld [vmem:[#allocation3 + $0x10] sm:$0xff]  ;;  %s1106_s2 = smov [#allocation9]  }
  0x38   :  { %v60_v2 = vld [vmem:[#allocation3 + $0x8] sm:$0xff]  ;;  %v1173_v3 = vunpack.c.l.bf16 %v59_v0  ;;  %v1175_v4 = vunpack.c.h.bf16 %v59_v0  ;;  %v1177_v5 = vunpack.c.l.bf16 %v61_v1  ;;  %v1179_v6 = vunpack.c.h.bf16 %v61_v1  ;;  %v62_v7 = vld [vmem:[#allocation3 + $0x18] sm:$0xff]  ;;  %v63_v13 = vld [vmem:[#allocation3 + $0x20] sm:$0xff]  ;;  %s784_s23 = sshll.u32 %s1106_s2, 4  ;;  %s785_s23 = int_to_ptr.vmem [resolvable:$true] %s784_s23 }
  0x39   :  { %v64_v8 = vld [vmem:[#allocation3 + $0x28] sm:$0xff]  ;;  %v1181_v9 = vunpack.c.l.bf16 %v60_v2  ;;  %v1183_v10 = vunpack.c.h.bf16 %v60_v2  ;;  %v1185_v11 = vunpack.c.l.bf16 %v62_v7  ;;  %v1187_v12 = vunpack.c.h.bf16 %v62_v7  ;;  %v66_v14 = vld [vmem:[#allocation3 + $0x38] sm:$0xff]  ;;  %v65_v30 = vld [vmem:[#allocation3 + $0x30] sm:$0xff]  ;;  %s1071_s24 = scalar_lea.vmem %s785_s23, 1536  ;;  %p1076_p11 = scmp.lt.s32.totalorder %s785_s23, %s785_s23 }
  0x3a   :  { %v83_v15 = vmul.f32 %v1173_v3, %v1173_v3  ;;  %v84_v16 = vmul.f32 %v1175_v4, %v1175_v4  ;;  %v87_v17 = vmul.f32 %v1177_v5, %v1177_v5  ;;  %v88_v18 = vmul.f32 %v1179_v6, %v1179_v6  ;;  %v925_v19 = vld [vmem:[#allocation8 + $0x4] ss:$12 sps:$4 sm:$0xff]   ;;  %v927_v20 = vld [vmem:[#allocation8] ss:$12 sps:$4 sm:$0xff]   ;;  %v928_v25 = vld [vmem:[#allocation8 + $0x1c] ss:$12 sps:$4 sm:$0xff]   ;;  %p1072_p10 = scmp.ne.s32.totalorder %s785_s23, %s1071_s24  ;;  %p1077_p12 = scmp.lt.s32.totalorder %s1071_s24, %s1071_s24 }
  0x3b   :  { %v85_v21 = vmul.f32 %v1181_v9, %v1181_v9  ;;  %v86_v22 = vmul.f32 %v1183_v10, %v1183_v10  ;;  %v89_v23 = vmul.f32 %v1185_v11, %v1185_v11  ;;  %v90_v24 = vmul.f32 %v1187_v12, %v1187_v12  ;;  %545 = vmatprep.subr.bf16.mxu0 %v925_v19  ;;  %v930_v35 = vld [vmem:[#allocation8 + $0x18] ss:$12 sps:$4 sm:$0xff]   ;;  %v931_v44 = vld [vmem:[#allocation8 + $0x34] ss:$12 sps:$4 sm:$0xff]   ;;  %v933_v48 = vld [vmem:[#allocation8 + $0x30] ss:$12 sps:$4 sm:$0xff]  }
  0x3c   :  { %v99_v26 = vadd.f32 %v84_v16, %v83_v15  ;;  %v105_v27 = vadd.f32 %v88_v18, %v87_v17  ;;  %v1205_v28 = vunpack.c.l.bf16 %v64_v8  ;;  %v1207_v29 = vunpack.c.h.bf16 %v64_v8  ;;  %546 = vmatpush1.bf16.msra.mxu0 %v927_v20  ;;  %v934_v52 = vld [vmem:[#allocation8 + $0x4c] ss:$12 sps:$4 sm:$0xff]   ;;  %v936_v53 = vld [vmem:[#allocation8 + $0x48] ss:$12 sps:$4 sm:$0xff]   ;;  %v937_v56 = vld [vmem:[#allocation8 + $0x64] ss:$12 sps:$4 sm:$0xff]   ;;  %p1078_p13 = por %p1077_p12, %p1076_p11 }
  0x3d   :  { %v102_v31 = vadd.f32 %v86_v22, %v85_v21  ;;  %v108_v32 = vadd.f32 %v90_v24, %v89_v23  ;;  %v1209_v33 = vunpack.c.l.bf16 %v63_v13  ;;  %v1211_v34 = vunpack.c.h.bf16 %v63_v13  ;;  %547 = vmatprep.subr.bf16.mxu0 %v928_v25  ;;  %v951_v57 = vld [vmem:[#allocation8 + $0xc8] ss:$12 sps:$4 sm:$0xff]   ;;  %v939_v59 = vld [vmem:[#allocation8 + $0x60] ss:$12 sps:$4 sm:$0xff]   ;;  %v942_v63 = vld [vmem:[#allocation8 + $0x78] ss:$12 sps:$4 sm:$0xff]  }
  0x3e   :  { %100 = vadd.xlane.f32.xlu0 %v99_v26  ;;  %106 = vadd.xlane.f32.xlu1 %v105_v27  ;;  %v93_v36 = vmul.f32 %v1205_v28, %v1205_v28  ;;  %v94_v37 = vmul.f32 %v1207_v29, %v1207_v29  ;;  %v1217_v38 = vunpack.c.l.bf16 %v66_v14  ;;  %v1219_v39 = vunpack.c.h.bf16 %v66_v14  ;;  %v953_v58 = vld [vmem:[#allocation8 + $0x8] ss:$12 sps:$4 sm:$0xff]   ;;  %v956_v61 = vld [vmem:[#allocation8 + $0xe0] ss:$12 sps:$4 sm:$0xff]   ;;  %v961_v0 = vld [vmem:[#allocation8 + $0xf8] ss:$12 sps:$4 sm:$0xff]   ;;  %p1079_p0 = pnand %p1078_p13, %p1072_p10 }
  0x3f   :  { %v91_v40 = vmul.f32 %v1209_v33, %v1209_v33  ;;  %v92_v41 = vmul.f32 %v1211_v34, %v1211_v34  ;;  %v1225_v42 = vunpack.c.l.bf16 %v65_v30  ;;  %v1227_v43 = vunpack.c.h.bf16 %v65_v30  ;;  %877 = vmatprep.subr.bf16.mxu1 %v951_v57  ;;  %v940_v60 = vld [vmem:[#allocation8 + $0x7c] ss:$12 sps:$4 sm:$0xff]   ;;  %v958_v62 = vld [vmem:[#allocation8 + $0x20] ss:$12 sps:$4 sm:$0xff]   ;;  %v963_v2 = vld [vmem:[#allocation8 + $0x38] ss:$12 sps:$4 sm:$0xff]  }
  0x40   :  { %v114_v45 = vadd.f32 %v94_v37, %v93_v36  ;;  %v97_v46 = vmul.f32 %v1217_v38, %v1217_v38  ;;  %v98_v47 = vmul.f32 %v1219_v39, %v1219_v39  ;;  %548 = vmatpush1.bf16.msra.mxu0 %v930_v35  ;;  %878 = vmatpush3.bf16.msra.mxu1 %v953_v58  ;;  %v943_v1 = vld [vmem:[#allocation8 + $0x94] ss:$12 sps:$4 sm:$0xff]   ;;  %v945_v7 = vld [vmem:[#allocation8 + $0x90] ss:$12 sps:$4 sm:$0xff]   ;;  %v946_v13 = vld [vmem:[#allocation8 + $0xac] ss:$12 sps:$4 sm:$0xff]  }
  0x41   :  { %v111_v49 = vadd.f32 %v92_v41, %v91_v40  ;;  %v95_v50 = vmul.f32 %v1225_v42, %v1225_v42  ;;  %v96_v51 = vmul.f32 %v1227_v43, %v1227_v43  ;;  %549 = vmatprep.subr.bf16.mxu0 %v931_v44  ;;  %879 = vmatprep.subr.bf16.mxu1 %v956_v61  ;;  %v966_v8 = vld [vmem:[#allocation8 + $0x110] ss:$12 sps:$4 sm:$0xff]   ;;  %v971_v15 = vld [vmem:[#allocation8 + $0x128] ss:$12 sps:$4 sm:$0xff]   ;;  %v976_v19 = vld [vmem:[#allocation8 + $0x140] ss:$12 sps:$4 sm:$0xff]  }
  0x42   :  { %103 = vadd.xlane.f32.xlu0 %v102_v31  ;;  %109 = vadd.xlane.f32.xlu1 %v108_v32  ;;  %v120_v54 = vadd.f32 %v98_v47, %v97_v46  ;;  %v968_v14 = vld [vmem:[#allocation8 + $0x50] ss:$12 sps:$4 sm:$0xff]   ;;  %v948_v16 = vld [vmem:[#allocation8 + $0xa8] ss:$12 sps:$4 sm:$0xff]   ;;  %v952_v20 = vld [vmem:[#allocation8 + $0xc0] ss:$12 sps:$4 sm:$0xff]  }
  0x43   :  { %v117_v55 = vadd.f32 %v96_v51, %v95_v50  ;;  %v949_v17 = vld [vmem:[#allocation8 + $0xc4] ss:$12 sps:$4 sm:$0xff]   ;;  %v973_v18 = vld [vmem:[#allocation8 + $0x68] ss:$12 sps:$4 sm:$0xff]   ;;  %v978_v21 = vld [vmem:[#allocation8 + $0x80] ss:$12 sps:$4 sm:$0xff]   ;;  %v167_v50 = vlaneseq }
  0x44   :  { %550 = vmatpush1.bf16.msra.mxu0 %v933_v48  ;;  %880 = vmatpush3.bf16.msra.mxu1 %v958_v62  ;;  %v954_v22 = vld [vmem:[#allocation8 + $0xdc] ss:$12 sps:$4 sm:$0xff]   ;;  %v981_v23 = vld [vmem:[#allocation8 + $0x158] ss:$12 sps:$4 sm:$0xff]   ;;  %v959_v25 = vld [vmem:[#allocation8 + $0xf4] ss:$12 sps:$4 sm:$0xff]  }
  0x45   :  { %551 = vmatprep.subr.bf16.mxu0 %v934_v52  ;;  %881 = vmatprep.subr.bf16.mxu1 %v961_v0  ;;  %v957_v24 = vld [vmem:[#allocation8 + $0xd8] ss:$12 sps:$4 sm:$0xff]   ;;  %v986_v27 = vld [vmem:[#allocation8 + $0x170] ss:$12 sps:$4 sm:$0xff]   ;;  %v967_v35 = vld [vmem:[#allocation8 + $0x108] ss:$12 sps:$4 sm:$0xff]  }
  0x46   :  { %115 = vadd.xlane.f32.xlu1 %v114_v45  ;;  %112 = vadd.xlane.f32.xlu0 %v111_v49  ;;  %v983_v26 = vld [vmem:[#allocation8 + $0x98] ss:$12 sps:$4 sm:$0xff]   ;;  %v962_v30 = vld [vmem:[#allocation8 + $0xf0] ss:$12 sps:$4 sm:$0xff]   ;;  %v972_v37 = vld [vmem:[#allocation8 + $0x120] ss:$12 sps:$4 sm:$0xff]  }
  0x47   :  { %v988_v31 = vld [vmem:[#allocation8 + $0xb0] ss:$12 sps:$4 sm:$0xff]   ;;  %v964_v32 = vld [vmem:[#allocation8 + $0x10c] ss:$12 sps:$4 sm:$0xff]   ;;  %v979_v44 = vld [vmem:[#allocation8 + $0x154] ss:$12 sps:$4 sm:$0xff]  }
  0x48   :  { %552 = vmatpush1.bf16.msra.mxu0 %v936_v53  ;;  %882 = vmatpush3.bf16.msra.mxu1 %v963_v2  ;;  %v969_v36 = vld [vmem:[#allocation8 + $0x124] ss:$12 sps:$4 sm:$0xff]   ;;  %v974_v40 = vld [vmem:[#allocation8 + $0x13c] ss:$12 sps:$4 sm:$0xff]   ;;  %v984_v46 = vld [vmem:[#allocation8 + $0x16c] ss:$12 sps:$4 sm:$0xff]  }
  0x49   :  { %553 = vmatprep.subr.bf16.mxu0 %v937_v56  ;;  %883 = vmatprep.subr.bf16.mxu1 %v966_v8  ;;  %v977_v41 = vld [vmem:[#allocation8 + $0x138] ss:$12 sps:$4 sm:$0xff]   ;;  %v982_v45 = vld [vmem:[#allocation8 + $0x150] ss:$12 sps:$4 sm:$0xff]   ;;  %v987_v47 = vld [vmem:[#allocation8 + $0x168] ss:$12 sps:$4 sm:$0xff]  }
  0x4a   :  { %121 = vadd.xlane.f32.xlu1 %v120_v54  ;;  %118 = vadd.xlane.f32.xlu0 %v117_v55  ;;  %v168_v57 = vshrl.u32 %v167_v50, 7 }
  0x4c   :  { %554 = vmatpush1.bf16.msra.mxu0 %v939_v59  ;;  %884 = vmatpush3.bf16.msra.mxu1 %v968_v14 }
  0x4d   :  { %555 = vmatprep.subr.bf16.mxu0 %v940_v60  ;;  %885 = vmatprep.subr.bf16.mxu1 %v971_v15  ;;  %v164_v60 = vld [vmem:[#allocation6] sm:$0x3] }
  0x4e   :  { %v165_v8 = vunpack.c.l.bf16 %v164_v60 }
  0x50   :  { %556 = vmatpush1.bf16.msra.mxu0 %v942_v63  ;;  %886 = vmatpush3.bf16.msra.mxu1 %v973_v18 }
  0x51   :  { %557 = vmatprep.subr.bf16.mxu0 %v943_v1  ;;  %887 = vmatprep.subr.bf16.mxu1 %v976_v19  ;;  %v173_v1 = vsub.s32 2, %v168_v57 }
  0x53   :  { %v174_v18 = vrot.slane %v165_v8, %v173_v1 }
  0x54   :  { %558 = vmatpush1.bf16.msra.mxu0 %v945_v7  ;;  %888 = vmatpush3.bf16.msra.mxu1 %v978_v21 }
  0x55   :  { %559 = vmatprep.subr.bf16.mxu0 %v946_v13  ;;  %889 = vmatprep.subr.bf16.mxu1 %v981_v23  ;;  %v169_v13 = vsub.s32 0, %v168_v57 }
  0x57   :  { %v170_v21 = vrot.slane %v165_v8, %v169_v13 }
  0x58   :  { %560 = vmatpush1.bf16.msra.mxu0 %v948_v16  ;;  %890 = vmatpush3.bf16.msra.mxu1 %v983_v26  ;;  %v184_v26 = vrot.slane %v174_v18, %v169_v13 }
  0x59   :  { %561 = vmatprep.subr.bf16.mxu0 %v949_v17  ;;  %891 = vmatprep.subr.bf16.mxu1 %v986_v27 }
  0x5c   :  { %562 = vmatpush1.bf16.msra.mxu0 %v952_v20  ;;  %892 = vmatpush3.bf16.msra.mxu1 %v988_v31 }
  0x5d   :  { %563 = vmatprep.subr.bf16.mxu0 %v954_v22 }
  0x60   :  { %564 = vmatpush1.bf16.msra.mxu0 %v957_v24 }
  0x61   :  { %565 = vmatprep.subr.bf16.mxu0 %v959_v25 }
  0x64   :  { %566 = vmatpush1.bf16.msra.mxu0 %v962_v30 }
  0x65   :  { %567 = vmatprep.subr.bf16.mxu0 %v964_v32  ;;  %v180_v32 = vrot.slane %v170_v21, %v169_v13 }
  0x68   :  { %568 = vmatpush1.bf16.msra.mxu0 %v967_v35 }
  0x69   :  { %569 = vmatprep.subr.bf16.mxu0 %v969_v36 }
  0x6c   :  { %570 = vmatpush1.bf16.msra.mxu0 %v972_v37 }
  0x6d   :  { %571 = vmatprep.subr.bf16.mxu0 %v974_v40 }
  0x70   :  { %572 = vmatpush1.bf16.msra.mxu0 %v977_v41 }
  0x71   :  { %573 = vmatprep.subr.bf16.mxu0 %v979_v44 }
  0x74   :  { %574 = vmatpush1.bf16.msra.mxu0 %v982_v45 }
  0x75   :  { %575 = vmatprep.subr.bf16.mxu0 %v984_v46 }
  0x78   :  { %576 = vmatpush1.bf16.msra.mxu0 %v987_v47 }
  0xcb   :  { %v101_v48 = vpop.xlane.xlu0 %100  ;;  %v107_v49 = vpop.xlane.xlu1 %106 }
  0xcc   :  { %v124_v51 = vmul.f32 0.00390625, %v101_v48  ;;  %v126_v52 = vmul.f32 0.00390625, %v107_v49 }
  0xce   :  { %v132_v53 = vadd.f32 1e-05, %v124_v51  ;;  %v134_v54 = vadd.f32 1e-05, %v126_v52 }
  0xcf   :  { %v104_v55 = vpop.xlane.xlu0 %103  ;;  %v110_v56 = vpop.xlane.xlu1 %109 }
  0xd0   :  { %989 = vrsqrt.f32 %v132_v53  ;;  %v125_v58 = vmul.f32 0.00390625, %v104_v55  ;;  %v127_v59 = vmul.f32 0.00390625, %v110_v56 }
  0xd1   :  { %991 = vrsqrt.f32 %v134_v54 }
  0xd2   :  { %v133_v61 = vadd.f32 1e-05, %v125_v58  ;;  %v135_v62 = vadd.f32 1e-05, %v127_v59 }
  0xd3   :  { %v116_v63 = vpop.xlane.xlu1 %115  ;;  %v113_v0 = vpop.xlane.xlu0 %112 }
  0xd4   :  { %993 = vrsqrt.f32 %v133_v61  ;;  %v129_v2 = vmul.f32 0.00390625, %v116_v63  ;;  %v128_v7 = vmul.f32 0.00390625, %v113_v0 }
  0xd5   :  { %995 = vrsqrt.f32 %v135_v62 }
  0xd6   :  { %v137_v14 = vadd.f32 1e-05, %v129_v2  ;;  %v136_v15 = vadd.f32 1e-05, %v128_v7 }
  0xd7   :  { %v122_v16 = vpop.xlane.xlu1 %121  ;;  %v119_v17 = vpop.xlane.xlu0 %118 }
  0xd8   :  { %997 = vrsqrt.f32 %v137_v14  ;;  %v131_v19 = vmul.f32 0.00390625, %v122_v16  ;;  %v130_v20 = vmul.f32 0.00390625, %v119_v17 }
  0xd9   :  { %999 = vrsqrt.f32 %v136_v15 }
  0xda   :  { %v990_v22 = vpop.eup %989  ;;  %v139_v23 = vadd.f32 1e-05, %v131_v19  ;;  %v138_v24 = vadd.f32 1e-05, %v130_v20 }
  0xdb   :  { %v992_v25 = vpop.eup %991  ;;  %v149_v30 = vmul.f32 %v990_v22, %v1175_v4  ;;  %v148_v31 = vmul.f32 %v990_v22, %v1173_v3 }
  0xdc   :  { %v153_v27 = vmul.f32 %v992_v25, %v1179_v6  ;;  %1001 = vrsqrt.f32 %v139_v23  ;;  %v152_v53 = vmul.f32 %v992_v25, %v1177_v5 }
  0xdd   :  { %1003 = vrsqrt.f32 %v138_v24  ;;  %v186_v45 = vmul.f32 %v184_v26, %v149_v30  ;;  %v185_v47 = vmul.f32 %v180_v32, %v148_v31 }
  0xde   :  { %v994_v35 = vpop.eup %993  ;;  %v190_v44 = vmul.f32 %v184_v26, %v153_v27  ;;  %v189_v57 = vmul.f32 %v180_v32, %v152_v53 }
  0xdf   :  { %v996_v36 = vpop.eup %995  ;;  %v151_v37 = vmul.f32 %v994_v35, %v1183_v10  ;;  %v150_v40 = vmul.f32 %v994_v35, %v1181_v9 }
  0xe0   :  { %v155_v41 = vmul.f32 %v996_v36, %v1187_v12  ;;  %v154_v10 = vmul.f32 %v996_v36, %v1185_v11 }
  0xe1   :  { %v188_v46 = vmul.f32 %v184_v26, %v151_v37  ;;  %v187_v6 = vmul.f32 %v180_v32, %v150_v40 }
  0xe2   :  { %v998_v48 = vpop.eup %997  ;;  %v192_v4 = vmul.f32 %v184_v26, %v155_v41  ;;  %v191_v58 = vmul.f32 %v180_v32, %v154_v10 }
  0xe3   :  { %v1000_v49 = vpop.eup %999  ;;  %v202_v3 = vpack.c.bf16 %v188_v46, %v186_v45  ;;  %v201_v50 = vpack.c.bf16 %v187_v6, %v185_v47  ;;  %v159_v51 = vmul.f32 %v998_v48, %v1207_v29  ;;  %v158_v5 = vmul.f32 %v998_v48, %v1205_v28 }
  0xe4   :  { %v204_v52 = vpack.c.bf16 %v192_v4, %v190_v44  ;;  %v157_v9 = vmul.f32 %v1000_v49, %v1211_v34  ;;  %v156_v29 = vmul.f32 %v1000_v49, %v1209_v33  ;;  %v203_v60 = vpack.c.bf16 %v191_v58, %v189_v57 }
  0xe5   :  { %577 = vmatprep.mubr.bf16.mxu0 %v202_v3  ;;  %650 = vmatprep.mubr.bf16.mxu1 %v202_v3  ;;  %v196_v55 = vmul.f32 %v184_v26, %v159_v51  ;;  %v195_v62 = vmul.f32 %v180_v32, %v158_v5 }
  0xe6   :  { %578 = vmatmul.mubr.bf16.vlgmr.msra.gmra.mrb[0].mxu0 %v201_v50  ;;  %651 = vmatmul.mubr.bf16.vlgmr.msra.gmra.mrb[0].mxu1 %v201_v50  ;;  %v1002_v12 = vpop.eup %1001  ;;  %v194_v54 = vmul.f32 %v184_v26, %v157_v9  ;;  %v193_v61 = vmul.f32 %v180_v32, %v156_v29 }
  0xe7   :  { %587 = vmatprep.mubr.bf16.mxu0 %v204_v52  ;;  %658 = vmatprep.mubr.bf16.mxu1 %v204_v52  ;;  %v1004_v56 = vpop.eup %1003  ;;  %v163_v34 = vmul.f32 %v1002_v12, %v1219_v39  ;;  %v162_v33 = vmul.f32 %v1002_v12, %v1217_v38 }
  0xe8   :  { %v206_v59 = vpack.c.bf16 %v196_v55, %v194_v54  ;;  %v161_v11 = vmul.f32 %v1004_v56, %v1227_v43  ;;  %v205_v1 = vpack.c.bf16 %v195_v62, %v193_v61  ;;  %v160_v2 = vmul.f32 %v1004_v56, %v1225_v42 }
  0xe9   :  { %v200_v0 = vmul.f32 %v184_v26, %v163_v34  ;;  %v199_v7 = vmul.f32 %v180_v32, %v162_v33 }
  0xea   :  { %v198_v63 = vmul.f32 %v184_v26, %v161_v11  ;;  %v197_v43 = vmul.f32 %v180_v32, %v160_v2 }
  0xec   :  { %v208_v28 = vpack.c.bf16 %v200_v0, %v198_v63  ;;  %v207_v39 = vpack.c.bf16 %v199_v7, %v197_v43 }
  0xee   :  { %588 = vmatmul.mubr.bf16.gmra.mrb[4].mxu0 %v203_v60  ;;  %659 = vmatmul.mubr.bf16.gmra.mrb[4].mxu1 %v203_v60 }
  0xef   :  { %597 = vmatprep.mubr.bf16.mxu0 %v206_v59  ;;  %666 = vmatprep.mubr.bf16.mxu1 %v206_v59 }
  0xf6   :  { %598 = vmatmul.mubr.bf16.gmra.mrb[8].mxu0 %v205_v1  ;;  %667 = vmatmul.mubr.bf16.gmra.mrb[8].mxu1 %v205_v1 }
  0xf7   :  { %607 = vmatprep.mubr.bf16.mxu0 %v208_v28  ;;  %674 = vmatprep.mubr.bf16.mxu1 %v208_v28 }
  0xfe   :  { %608 = vmatmul.mubr.bf16.gmra.mrb[12].mxu0 %v207_v39  ;;  %675 = vmatmul.mubr.bf16.gmra.mrb[12].mxu1 %v207_v39 }
 0x1b9   :  { %v579_v8 = vpop.f32.mrb[0].mxu0  ;;  %v893_v13 = vpop.f32.mrb[0].mxu1 }
 0x1ba   :  { %v581_v14 = vpop.f32.mrb[1].mxu0  ;;  %v894_v15 = vpop.f32.mrb[1].mxu1 }
 0x1bb   :  { %v861_v16 = vpack.c.bf16 %v581_v14, %v579_v8  ;;  %v895_v17 = vadd.f32 %v894_v15, %v893_v13  ;;  %v583_v18 = vpop.f32.mrb[2].mxu0  ;;  %v896_v42 = vpop.f32.mrb[2].mxu1 }
 0x1bc   :  { %v585_v19 = vpop.f32.mrb[3].mxu0  ;;  %v897_v38 = vpop.f32.mrb[3].mxu1 }
 0x1bd   :  { %763 = vst [vmem:[#allocation9] sm:$0xff] %v861_v16  ;;  %v862_v20 = vpack.c.bf16 %v895_v17, %v895_v17  ;;  %v863_v21 = vpack.c.bf16 %v585_v19, %v583_v18  ;;  %v898_v22 = vadd.f32 %v897_v38, %v896_v42 }
 0x1bf   :  { %764 = vst [vmem:[#allocation9 + $0x8] sm:$0xf] %v862_v20  ;;  %765 = vst [vmem:[#allocation9 + $0xc] sm:$0xff] %v863_v21  ;;  %v864_v23 = vpack.c.bf16 %v898_v22, %v898_v22 }
 0x1c1   :  { %766 = vst [vmem:[#allocation9 + $0x14] sm:$0xf] %v864_v23  ;;  %v589_v24 = vpop.f32.mrb[4].mxu0  ;;  %v899_v25 = vpop.f32.mrb[4].mxu1 }
 0x1c2   :  { %v591_v26 = vpop.f32.mrb[5].mxu0  ;;  %v900_v27 = vpop.f32.mrb[5].mxu1 }
 0x1c3   :  { %v865_v30 = vpack.c.bf16 %v591_v26, %v589_v24  ;;  %v901_v31 = vadd.f32 %v900_v27, %v899_v25  ;;  %v593_v32 = vpop.f32.mrb[6].mxu0  ;;  %v902_v35 = vpop.f32.mrb[6].mxu1 }
 0x1c4   :  { %v595_v36 = vpop.f32.mrb[7].mxu0  ;;  %v903_v37 = vpop.f32.mrb[7].mxu1 }
 0x1c5   :  { %767 = vst [vmem:[#allocation9 + $0x18] sm:$0xff] %v865_v30  ;;  %v866_v40 = vpack.c.bf16 %v901_v31, %v901_v31  ;;  %v867_v41 = vpack.c.bf16 %v595_v36, %v593_v32  ;;  %v904_v44 = vadd.f32 %v903_v37, %v902_v35 }
 0x1c7   :  { %768 = vst [vmem:[#allocation9 + $0x20] sm:$0xf] %v866_v40  ;;  %769 = vst [vmem:[#allocation9 + $0x24] sm:$0xff] %v867_v41  ;;  %v868_v45 = vpack.c.bf16 %v904_v44, %v904_v44 }
 0x1c9   :  { %770 = vst [vmem:[#allocation9 + $0x2c] sm:$0xf] %v868_v45  ;;  %v599_v46 = vpop.f32.mrb[8].mxu0  ;;  %v905_v47 = vpop.f32.mrb[8].mxu1 }
 0x1ca   :  { %v601_v6 = vpop.f32.mrb[9].mxu0  ;;  %v906_v48 = vpop.f32.mrb[9].mxu1 }
 0x1cb   :  { %v869_v4 = vpack.c.bf16 %v601_v6, %v599_v46  ;;  %v907_v49 = vadd.f32 %v906_v48, %v905_v47  ;;  %v603_v3 = vpop.f32.mrb[10].mxu0  ;;  %v908_v50 = vpop.f32.mrb[10].mxu1 }
 0x1cc   :  { %v605_v51 = vpop.f32.mrb[11].mxu0  ;;  %v909_v52 = vpop.f32.mrb[11].mxu1 }
 0x1cd   :  { %771 = vst [vmem:[#allocation9 + $0x30] sm:$0xff] %v869_v4  ;;  %v870_v53 = vpack.c.bf16 %v907_v49, %v907_v49  ;;  %v871_v10 = vpack.c.bf16 %v605_v51, %v603_v3  ;;  %v910_v9 = vadd.f32 %v909_v52, %v908_v50 }
 0x1cf   :  { %772 = vst [vmem:[#allocation9 + $0x38] sm:$0xf] %v870_v53  ;;  %773 = vst [vmem:[#allocation9 + $0x3c] sm:$0xff] %v871_v10  ;;  %v872_v12 = vpack.c.bf16 %v910_v9, %v910_v9 }
 0x1d1   :  { %774 = vst [vmem:[#allocation9 + $0x44] sm:$0xf] %v872_v12  ;;  %v609_v54 = vpop.f32.mrb[12].mxu0  ;;  %v911_v55 = vpop.f32.mrb[12].mxu1 }
 0x1d2   :  { %v611_v56 = vpop.f32.mrb[13].mxu0  ;;  %v912_v57 = vpop.f32.mrb[13].mxu1 }
 0x1d3   :  { %v873_v58 = vpack.c.bf16 %v611_v56, %v609_v54  ;;  %v913_v29 = vadd.f32 %v912_v57, %v911_v55  ;;  %v613_v5 = vpop.f32.mrb[14].mxu0  ;;  %v914_v59 = vpop.f32.mrb[14].mxu1 }
 0x1d4   :  { %v615_v11 = vpop.f32.mrb[15].mxu0  ;;  %v915_v34 = vpop.f32.mrb[15].mxu1 }
 0x1d5   :  { %775 = vst [vmem:[#allocation9 + $0x48] sm:$0xff] %v873_v58  ;;  %v874_v60 = vpack.c.bf16 %v913_v29, %v913_v29  ;;  %v875_v61 = vpack.c.bf16 %v615_v11, %v613_v5  ;;  %v916_v62 = vadd.f32 %v915_v34, %v914_v59 }
 0x1d7   :  { %776 = vst [vmem:[#allocation9 + $0x50] sm:$0xf] %v874_v60  ;;  %777 = vst [vmem:[#allocation9 + $0x54] sm:$0xff] %v875_v61  ;;  %v876_v63 = vpack.c.bf16 %v916_v62, %v916_v62 }
 0x1d9   :  { %778 = vst [vmem:[#allocation9 + $0x5c] sm:$0xf] %v876_v63 }
 0x1da   :  { %1082 = shalt.err (!%p1079_p0)
}
 0x1db   :  { %s1083_s27 = scalar_lea.hbm %s1271_s3, 1536 }
 0x1dc   :  { %p1084_p1 = scmp.ne.s32.totalorder %s1271_s3, %s1083_s27  ;;  %p1087_p2 = scmp.lt.u32.totalorder %s1083_s27, %s1271_s3 }
 0x1de   :  { %p1089_p3 = pnand %p1087_p2, %p1084_p1 }
 0x1e0   :  { %1092 = shalt.err (!%p1089_p3)
}
 0x1e1   :  { %790 = dma.vmem_to_hbm [thread:$0]  %s785_s23, 1536, %s1271_s3, [#allocation5], %s1104_s0, %s1104_s0, %s1105_s15  }
 0x1e2   :  { %1097 = dma.done.wait [#allocation5], 1536  }
 0x1e3   :  { %1098 = vsyncadd [#allocation5], 4294965760 }
 0x1e4   :  { %794 = vsyncpa [#allocation4], 1 }
 0x1e5   :  { %795 = vsyncpa [#allocation7], 1 }
 0x1e6   :  { %796 = vsyncpa [#allocation5], 1 }

</bundles_post_ra>
